<compile_context>
chip_gen: v5e
topology: v5e:2x2
jax: 0.10.0
libtpu: 0.0.40
codegen_flags: <defaults>
</compile_context>

<pallas_src>
import functools

import jax
import jax.numpy as jnp
from jax import lax
from jax.experimental import pallas as pl
from jax.experimental.pallas import tpu as pltpu


_MXU_DTYPE = jnp.bfloat16          # MXU feed dtype; accumulation stays f32
_TK_MAX = 32768                    # cap on the lane-aligned reduction tile
_SLACK_BYTES = 2 * 1024 * 1024     # headroom for compiler-internal scratch
_RESIDENT_N_MAX = 1024             # resident (n, n) output block up to here


def _round_up(x, m):
    return ((x + m - 1) // m) * m


@functools.lru_cache(maxsize=None)
def _vmem_limit_bytes():
    """Generation-aware VMEM budget: ~75% of physical VMEM per core
    (≈48 MiB on v7x's 64 MiB, ≈96 MiB on v5e/v6e's 128 MiB)."""
    capacity = 64 * 1024 * 1024            # conservative (v7x-safe) fallback
    try:
        cap = int(getattr(pltpu.get_tpu_info(), "vmem_capacity_bytes", 0))
        if cap > 0:
            capacity = cap
    except Exception:
        pass
    return min((capacity * 3) // 4, 112 * 1024 * 1024)


def _pick_tk(L, feats_budget, feat_rows, itemsize):
    """Reduction tile: as wide as the double-buffered VMEM budget allows,
    aiming for ~8 pipelined grid steps; tk == L (single step) when it fits."""
    cap = feats_budget // (2 * feat_rows * itemsize)
    cap = max(256, min((cap // 256) * 256, _TK_MAX))
    tk_target = max(2048, _round_up(-(-L // 8), 256))
    tk = min(cap, tk_target, _round_up(L, 256))
    if tk >= L:
        return L, 1, False                 # one full-width block, no masking
    gk = -(-L // tk)
    return tk, gk, (L % tk) != 0


def _resident_plan(n, with_target, feats_itemsize):
    """Can we keep the whole (n, n) f32 Gram (and target) resident in VMEM
    and still afford a decent (>= 512-lane) double-buffered feature tile?"""
    vmem_limit = _vmem_limit_bytes()
    resident = 2 * 4 * n * n * (2 if with_target else 1)
    budget = vmem_limit - resident - _SLACK_BYTES
    ok = (n <= _RESIDENT_N_MAX) and budget >= 2 * n * 512 * feats_itemsize
    return ok, budget, vmem_limit


def _prep_features(x):
    b, c, h, w = x.shape
    n, L = b * c, h * w
    feats = x.reshape(n, L)                # view only; no pad, no extra pass
    return feats, n, L, float(b * c * h * w)


# ---------------------------------------------------------------------------
# Kernel helpers
# ---------------------------------------------------------------------------
def _masked_tile(f_ref, k, tk, l_total, ragged):
    """Load a feature tile, cast to the MXU dtype, zero any garbage tail
    columns of a ragged last tile (Pallas does not zero-fill OOB regions)."""
    f = f_ref[...]
    if f.dtype != _MXU_DTYPE:
        f = f.astype(_MXU_DTYPE)
    if ragged:
        col = lax.broadcasted_iota(jnp.int32, f.shape, 1) + k * tk
        f = jnp.where(col < l_total, f, jnp.zeros_like(f))
    return f


# ---------------------------------------------------------------------------
# Kernels: resident (n, n) output block (n <= 1024).  Grid = (gk,).
# ---------------------------------------------------------------------------
def _gram_kernel_resident(feat_ref, g_ref, *, inv_norm, l_total, tk, ragged):
    k = pl.program_id(0)

    @pl.when(k == 0)
    def _():
        g_ref[...] = jnp.zeros_like(g_ref)

    f = _masked_tile(feat_ref, k, tk, l_total, ragged)
    g_ref[...] += lax.dot_general(
        f, f, dimension_numbers=(((1,), (1,)), ((), ())),
        preferred_element_type=jnp.float32)

    @pl.when(k == pl.num_programs(0) - 1)
    def _():
        g_ref[...] = g_ref[...] * inv_norm


def _gram_mse_kernel_resident(feat_ref, tgt_ref, g_ref, loss_ref, *,
                              inv_norm, l_total, tk, ragged):
    k = pl.program_id(0)

    @pl.when(k == 0)
    def _():
        g_ref[...] = jnp.zeros_like(g_ref)

    f = _masked_tile(feat_ref, k, tk, l_total, ragged)
    g_ref[...] += lax.dot_general(
        f, f, dimension_numbers=(((1,), (1,)), ((), ())),
        preferred_element_type=jnp.float32)

    # Loss block index is constant across k, so the single write on the last
    # step is flushed at grid end (k must remain the last/innermost axis).
    @pl.when(k == pl.num_programs(0) - 1)
    def _():
        g = g_ref[...] * inv_norm
        g_ref[...] = g
        d = g - tgt_ref[...]
        loss_ref[...] = jnp.sum(d * d).reshape(1, 1)   # normalized in wrapper


# ---------------------------------------------------------------------------
# Kernels: tiled output fallback for very large n.  Grid = (gm, gn, gk).
# ---------------------------------------------------------------------------
def _gram_kernel_tiled(fi_ref, fj_ref, g_ref, *, inv_norm, l_total, tk, ragged_k):
    k = pl.program_id(2)

    @pl.when(k == 0)
    def _():
        g_ref[...] = jnp.zeros_like(g_ref)

    fi = _masked_tile(fi_ref, k, tk, l_total, ragged_k)
    fj = _masked_tile(fj_ref, k, tk, l_total, ragged_k)
    g_ref[...] += lax.dot_general(
        fi, fj, dimension_numbers=(((1,), (1,)), ((), ())),
        preferred_element_type=jnp.float32)

    @pl.when(k == pl.num_programs(2) - 1)
    def _():
        g_ref[...] = g_ref[...] * inv_norm


def _gram_mse_kernel_tiled(fi_ref, fj_ref, tgt_ref, g_ref, loss_ref, *,
                           inv_norm, l_total, tk, ragged_k,
                           n_total, tm, tn, ragged_n):
    k = pl.program_id(2)

    @pl.when(k == 0)
    def _():
        g_ref[...] = jnp.zeros_like(g_ref)

    fi = _masked_tile(fi_ref, k, tk, l_total, ragged_k)
    fj = _masked_tile(fj_ref, k, tk, l_total, ragged_k)
    g_ref[...] += lax.dot_general(
        fi, fj, dimension_numbers=(((1,), (1,)), ((), ())),
        preferred_element_type=jnp.float32)

    @pl.when(k == pl.num_programs(2) - 1)
    def _():
        g = g_ref[...] * inv_norm
        g_ref[...] = g
        d = g - tgt_ref[...]
        if ragged_n:   # drop padded rows/cols of edge tiles from the loss
            row = lax.broadcasted_iota(jnp.int32, d.shape, 0) + pl.program_id(0) * tm
            col = lax.broadcasted_iota(jnp.int32, d.shape, 1) + pl.program_id(1) * tn
            d = jnp.where((row < n_total) & (col < n_total), d, jnp.zeros_like(d))
        loss_ref[...] = jnp.sum(d * d).reshape(1, 1, 1, 1)


# ---------------------------------------------------------------------------
# Wrappers
# ---------------------------------------------------------------------------
def gram_matrix(x):
    """Pallas equivalent of PyTorch gram_matrix: x is NCHW, returns f32 (n, n)."""
    feats, n, L, norm = _prep_features(x)
    inv_norm = 1.0 / norm
    itemsize = jnp.dtype(feats.dtype).itemsize

    resident, budget, vmem_limit = _resident_plan(n, False, itemsize)
    if resident:
        tk, gk, ragged = _pick_tk(L, budget, n, itemsize)
        kernel = functools.partial(_gram_kernel_resident, inv_norm=inv_norm,
                                   l_total=L, tk=tk, ragged=ragged)
        return pl.pallas_call(
            kernel,
            out_shape=jax.ShapeDtypeStruct((n, n), jnp.float32),
            grid_spec=pltpu.PrefetchScalarGridSpec(
                num_scalar_prefetch=0,
                grid=(gk,),
                in_specs=[pl.BlockSpec((n, tk), lambda k: (0, k))],
                out_specs=pl.BlockSpec((n, n), lambda k: (0, 0)),
            ),
            compiler_params=pltpu.CompilerParams(
                dimension_semantics=("arbitrary",),
                vmem_limit_bytes=vmem_limit),
        )(feats)

    # Large-n fallback: F is re-read (gm + gn) times, so cast it to bf16 once
    # in the wrapper to halve that DMA.
    feats_mx = feats if feats.dtype == _MXU_DTYPE else feats.astype(_MXU_DTYPE)
    mx_itemsize = jnp.dtype(_MXU_DTYPE).itemsize
    tm = tn = min(256, n)
    gm, gn = -(-n // tm), -(-n // tn)
    budget = vmem_limit - 2 * 4 * tm * tn - _SLACK_BYTES
    tk, gk, ragged_k = _pick_tk(L, budget, tm + tn, mx_itemsize)
    kernel = functools.partial(_gram_kernel_tiled, inv_norm=inv_norm,
                               l_total=L, tk=tk, ragged_k=ragged_k)
    return pl.pallas_call(
        kernel,
        out_shape=jax.ShapeDtypeStruct((n, n), jnp.float32),
        grid_spec=pltpu.PrefetchScalarGridSpec(
            num_scalar_prefetch=0,
            grid=(gm, gn, gk),
            in_specs=[pl.BlockSpec((tm, tk), lambda i, j, k: (i, k)),
                      pl.BlockSpec((tn, tk), lambda i, j, k: (j, k))],
            out_specs=pl.BlockSpec((tm, tn), lambda i, j, k: (i, j)),
        ),
        compiler_params=pltpu.CompilerParams(
            dimension_semantics=("parallel", "parallel", "arbitrary"),
            vmem_limit_bytes=vmem_limit),
    )(feats_mx, feats_mx)


def _gram_and_mse(x, target):
    """Fused: Gram matrix of x and MSE(G, target).  Returns (G, loss)."""
    feats, n, L, norm = _prep_features(x)
    inv_norm = 1.0 / norm
    itemsize = jnp.dtype(feats.dtype).itemsize

    resident, budget, vmem_limit = _resident_plan(n, True, itemsize)
    if resident:
        tk, gk, ragged = _pick_tk(L, budget, n, itemsize)
        kernel = functools.partial(_gram_mse_kernel_resident, inv_norm=inv_norm,
                                   l_total=L, tk=tk, ragged=ragged)
        G, loss_part = pl.pallas_call(
            kernel,
            out_shape=(jax.ShapeDtypeStruct((n, n), jnp.float32),
                       jax.ShapeDtypeStruct((1, 1), jnp.float32)),
            grid_spec=pltpu.PrefetchScalarGridSpec(
                num_scalar_prefetch=0,
                grid=(gk,),
                in_specs=[pl.BlockSpec((n, tk), lambda k: (0, k)),
                          pl.BlockSpec((n, n), lambda k: (0, 0))],
                out_specs=[pl.BlockSpec((n, n), lambda k: (0, 0)),
                           pl.BlockSpec((1, 1), lambda k: (0, 0))],
            ),
            compiler_params=pltpu.CompilerParams(
                dimension_semantics=("arbitrary",),
                vmem_limit_bytes=vmem_limit),
        )(feats, target)
    else:
        feats_mx = feats if feats.dtype == _MXU_DTYPE else feats.astype(_MXU_DTYPE)
        mx_itemsize = jnp.dtype(_MXU_DTYPE).itemsize
        tm = tn = min(256, n)
        gm, gn = -(-n // tm), -(-n // tn)
        budget = vmem_limit - 2 * 2 * 4 * tm * tn - _SLACK_BYTES
        tk, gk, ragged_k = _pick_tk(L, budget, tm + tn, mx_itemsize)
        kernel = functools.partial(
            _gram_mse_kernel_tiled, inv_norm=inv_norm, l_total=L, tk=tk,
            ragged_k=ragged_k, n_total=n, tm=tm, tn=tn, ragged_n=(n % tm) != 0)
        G, loss_part = pl.pallas_call(
            kernel,
            out_shape=(jax.ShapeDtypeStruct((n, n), jnp.float32),
                       jax.ShapeDtypeStruct((gm, gn, 1, 1), jnp.float32)),
            grid_spec=pltpu.PrefetchScalarGridSpec(
                num_scalar_prefetch=0,
                grid=(gm, gn, gk),
                in_specs=[pl.BlockSpec((tm, tk), lambda i, j, k: (i, k)),
                          pl.BlockSpec((tn, tk), lambda i, j, k: (j, k)),
                          pl.BlockSpec((tm, tn), lambda i, j, k: (i, j))],
                out_specs=[pl.BlockSpec((tm, tn), lambda i, j, k: (i, j)),
                           pl.BlockSpec((1, 1, 1, 1),
                                        lambda i, j, k: (i, j, 0, 0))],
            ),
            compiler_params=pltpu.CompilerParams(
                dimension_semantics=("parallel", "parallel", "arbitrary"),
                vmem_limit_bytes=vmem_limit),
        )(feats_mx, feats_mx, target)

    loss = jnp.sum(loss_part) * (1.0 / float(n * n))
    return G, loss


class StyleLoss:
    """JAX/Pallas port of the PyTorch StyleLoss module."""

    def __init__(self, target_feature):
        # .detach() in PyTorch -> stop_gradient here (target is a constant).
        self.target = jax.lax.stop_gradient(gram_matrix(target_feature))
        self.loss = None

    def forward(self, x):
        G, loss = _gram_and_mse(x, self.target)
        self.loss = loss
        self._G = G   # kept for inspection / testing
        return x      # pass-through, same as the PyTorch module

    __call__ = forward


# ---------------------------------------------------------------------------
# Pure-JAX reference (for correctness check).
# ---------------------------------------------------------------------------
def _gram_ref(x):
    b, c, h, w = x.shape
    f = x.reshape(b * c, h * w)
    G = jnp.matmul(f, f.T, precision=lax.Precision.HIGHEST)
    return G / (b * c * h * w)


if __name__ == "__main__":
    key = jax.random.PRNGKey(0)

    # Case 1: small primary shape (tk == L, single grid step).
    # Case 2: n = 512 now takes the resident-output path (F streamed once).
    # Case 3: ragged H*W = 35000 -> multi-step reduction + in-kernel tail mask.
    shapes = [(2, 4, 16, 16), (2, 256, 8, 8), (1, 8, 175, 200)]
    for shape in shapes:
        key, k1, k2 = jax.random.split(key, 3)
        target_feature = jax.random.normal(k1, shape, dtype=jnp.float32)
        x = jax.random.normal(k2, shape, dtype=jnp.float32)

        module = StyleLoss(target_feature)
        out = jax.block_until_ready(module(x))
        loss = jax.block_until_ready(module.loss)

        G_ref = _gram_ref(x)
        T_ref = _gram_ref(target_feature)
        loss_ref = jnp.mean((G_ref - T_ref) ** 2)

        # Tolerances account for the bf16 MXU feed (f32 accumulation).
        assert out.shape == x.shape and jnp.allclose(out, x), shape
        assert jnp.allclose(module._G, G_ref, rtol=2e-2, atol=2e-3), shape
        assert jnp.allclose(loss, loss_ref, rtol=5e-2, atol=1e-8), shape

    print("KERNEL_OK")
</pallas_src>

<mosaic_0001>
module attributes {stable_mosaic.version = 11 : i64} {
  func.func @_gram_kernel_resident(%arg0: i32, %arg1: memref<8x256xf32, #tpu.memory_space<vmem>>, %arg2: memref<8x8xf32, #tpu.memory_space<vmem>>) attributes {dimension_semantics = [#tpu.dimension_semantics<arbitrary>], iteration_bounds = array<i64: 1>, scalar_prefetch = 0 : i64, scratch_operands = 0 : i64, tpu.core_type = #tpu.core_type<tc>, window_params = [{transform_indices = @transform_0, window_bounds = array<i64: 8, 256>}, {pipeline_mode = #tpu.pipeline_mode<synchronous>, transform_indices = @transform_1, window_bounds = array<i64: 8, 8>}]} {
    %c0_i32 = arith.constant 0 : i32
    %0 = arith.cmpi eq, %arg0, %c0_i32 : i32
    %1 = arith.extui %0 : i1 to i32
    %c0_i32_0 = arith.constant 0 : i32
    %2 = arith.cmpi ne, %1, %c0_i32_0 : i32
    scf.if %2 {
      %cst_8 = arith.constant 0.000000e+00 : f32
      %12 = vector.broadcast %cst_8 : f32 to vector<8x8xf32>
      %c0_9 = arith.constant 0 : index
      %c0_10 = arith.constant 0 : index
      %13 = vector.load %arg2[%c0_9, %c0_10] : memref<8x8xf32, #tpu.memory_space<vmem>>, vector<8x8xf32>
      tpu.vector_store %arg2[%c0_9, %c0_10], %12 {strides = array<i32>} : memref<8x8xf32, #tpu.memory_space<vmem>>, vector<8x8xf32>,
    } else {
    }
    %c0 = arith.constant 0 : index
    %c0_1 = arith.constant 0 : index
    %3 = vector.load %arg1[%c0, %c0_1] : memref<8x256xf32, #tpu.memory_space<vmem>>, vector<8x256xf32>
    %4 = arith.truncf %3 : vector<8x256xf32> to vector<8x256xbf16>
    %c0_2 = arith.constant 0 : index
    %c0_3 = arith.constant 0 : index
    %5 = vector.load %arg2[%c0_2, %c0_3] : memref<8x8xf32, #tpu.memory_space<vmem>>, vector<8x8xf32>
    %cst = arith.constant dense<0.000000e+00> : vector<8x8xf32>
    %6 = tpu.matmul %4, %4, %cst {dimension_numbers = #tpu.dot_dimension_numbers<[1], [1], [0], [0], [0, 0, 1, 0], [], []>} : vector<8x256xbf16>, vector<8x256xbf16>, vector<8x8xf32> -> vector<8x8xf32>
    %7 = arith.addf %5, %6 : vector<8x8xf32>
    %c0_4 = arith.constant 0 : index
    %c0_5 = arith.constant 0 : index
    %8 = vector.load %arg2[%c0_4, %c0_5] : memref<8x8xf32, #tpu.memory_space<vmem>>, vector<8x8xf32>
    tpu.vector_store %arg2[%c0_4, %c0_5], %7 {strides = array<i32>} : memref<8x8xf32, #tpu.memory_space<vmem>>, vector<8x8xf32>,
    %c0_i32_6 = arith.constant 0 : i32
    %9 = arith.cmpi eq, %arg0, %c0_i32_6 : i32
    %10 = arith.extui %9 : i1 to i32
    %c0_i32_7 = arith.constant 0 : i32
    %11 = arith.cmpi ne, %10, %c0_i32_7 : i32
    scf.if %11 {
      %c0_8 = arith.constant 0 : index
      %c0_9 = arith.constant 0 : index
      %12 = vector.load %arg2[%c0_8, %c0_9] : memref<8x8xf32, #tpu.memory_space<vmem>>, vector<8x8xf32>
      %cst_10 = arith.constant 4.8828125E-4 : f32
      %13 = vector.broadcast %cst_10 : f32 to vector<8x8xf32>
      %14 = arith.mulf %12, %13 : vector<8x8xf32>
      %c0_11 = arith.constant 0 : index
      %c0_12 = arith.constant 0 : index
      %15 = vector.load %arg2[%c0_11, %c0_12] : memref<8x8xf32, #tpu.memory_space<vmem>>, vector<8x8xf32>
      tpu.vector_store %arg2[%c0_11, %c0_12], %14 {strides = array<i32>} : memref<8x8xf32, #tpu.memory_space<vmem>>, vector<8x8xf32>,
    } else {
    }
    return
  }
  func.func @transform_0(%arg0: i32) -> (i32, i32) {
    %c0_i32 = arith.constant 0 : i32
    %c0_i32_0 = arith.constant 0 : i32
    return %c0_i32, %arg0 : i32, i32
  }
  func.func @transform_1(%arg0: i32) -> (i32, i32) {
    %c0_i32 = arith.constant 0 : i32
    %c0_i32_0 = arith.constant 0 : i32
    %c0_i32_1 = arith.constant 0 : i32
    return %c0_i32, %c0_i32_0 : i32, i32
  }
}

</mosaic_0001>

<bundles_post_ra>
// kernel: tpu_custom_call.1
= control target key start
LH: loop header
LB: loop body
LE: loop exit
PB: predicated region body
PF: predicated region fallthrough
CT: control target
= control target key end

     0   :  { %6 = vsyncpa [#allocation3], 0  ;;  %s164_s0 = inlined_call_operand.hbm [shape: f32[8,256], index: 0, kind: input, shape index: {}]   ;;  %s165_s1 = inlined_call_operand.hbm [shape: f32[8,8], index: 1, kind: output, shape index: {}]  }
   0x1   :  { %7 = vsyncpa [#allocation4], 0  ;;  %s13_s8 = sshll.u32 %s164_s0, 4  ;;  %s142_s9 = smov [#allocation2]   ;;  %s14_s8 = int_to_ptr.hbm [resolvable:$true] %s13_s8 }
   0x2   :  { %s15_s10 = sshll.u32 %s142_s9, 4  ;;  %s16_s10 = int_to_ptr.vmem [resolvable:$true] %s15_s10 }
   0x3   :  { %18 = dma.hbm_to_vmem [thread:$0]  %s14_s8, 256, %s16_s10, [#allocation3]  }
   0x4   :  { %138 = dma.done.wait [#allocation3], 256  }
   0x5   :  { %139 = vsyncadd [#allocation3], 4294967040  ;;  %v30_v0 = vld [vmem:[#allocation2] sm:$0xff]  ;;  %v31_v1 = vld [vmem:[#allocation2 + $0x8] sm:$0xff]  ;;  %vm28_vm0 = vcmask 64512   ;;  %v143_v4 = vmov 0.0  }
   0x6   :  { %v32_v2 = vpack.c.bf16 %v30_v0, %v30_v0  ;;  %v33_v3 = vpack.c.bf16 %v31_v1, %v31_v1  ;;  %29 = vst.msk [vmem:[#allocation5] sm:$0xff] %vm28_vm0, %v143_v4  ;;  %s144_s0 = smov [#allocation5]   ;;  %s77_s14 = sshll.u32 %s165_s1, 4  ;;  %s78_s14 = int_to_ptr.hbm [resolvable:$true] %s77_s14 }
   0x7   :  { %s75_s11 = sshll.u32 %s144_s0, 4  ;;  %s76_s11 = int_to_ptr.vmem [resolvable:$true] %s75_s11 }
   0x8   :  { %42 = vmatpush.bf16.xpose.msra.mxu0 %v32_v2  ;;  %55 = vmatpush.bf16.xpose.msra.mxu1 %v33_v3 }
   0xd   :  { %v34_v6 = vld [vmem:[#allocation5] sm:$0xff] }
   0xf   :  { %43 = vmatmul.bf16.vlgmr.msra.gmra.mxu0 %v32_v2  ;;  %56 = vmatmul.bf16.vlgmr.msra.gmra.mxu1 %v33_v3 }
  0x8c   :  { %v44_v5 = vpop.f32.mrf.mxu0  ;;  %v57_v7 = vpop.f32.mrf.mxu1 }
  0x8d   :  { %v58_v8 = vadd.f32 %v57_v7, %v44_v5 }
  0x8f   :  { %v61_v9 = vadd.f32 %v58_v8, %v34_v6 }
  0x91   :  { %63 = vst.msk [vmem:[#allocation5] sm:$0xff] %vm28_vm0, %v61_v9 }
  0x94   :  { %v46_v10 = vpop.f32.mrf.mxu0  ;;  %v59_v11 = vpop.f32.mrf.mxu1 }
  0x98   :  { %v67_v12 = vld [vmem:[#allocation5] sm:$0xff] }
  0x99   :  { %v68_v13 = vmul.f32 0.00048828125, %v67_v12 }
  0x9b   :  { %69 = vst.msk [vmem:[#allocation5] sm:$0xff] %vm28_vm0, %v68_v13 }
  0x9c   :  { %80 = dma.vmem_to_hbm [thread:$0]  %s76_s11, 128, %s78_s14, [#allocation4]  }
  0x9d   :  { %140 = dma.done.wait [#allocation4], 128  }
  0x9e   :  { %141 = vsyncadd [#allocation4], 4294967168 }
  0x9f   :  { %85 = vsyncpa [#allocation3], 1 }
  0xa0   :  { %86 = vsyncpa [#allocation4], 1 }

</bundles_post_ra>
